<compile_context>
chip_gen: v5e
topology: v5e:2x2
jax: 0.10.0
libtpu: 0.0.40
codegen_flags: <defaults>
</compile_context>

<pallas_src>
import functools

import jax
import jax.numpy as jnp
from jax import lax
from jax.experimental import pallas as pl
from jax.experimental.pallas import tpu as pltpu


def _choose_block_rows(n_rows, n_cols, itemsize, target_bytes=1 << 20):
    """Pick a row-tile size of roughly `target_bytes`, sublane-aligned for the dtype."""
    sub = 16 if itemsize == 2 else 8
    rows = target_bytes // max(n_cols * itemsize, 1)
    rows = max((rows // sub) * sub, sub)
    if rows >= n_rows:
        return n_rows            # single row block == full array dim (always legal)
    return rows


# ---------------------------------------------------------------------------
# Fused training kernel: phase 0 accumulates, phase 1 finalizes + normalizes.
#   kernel(x_ref, o_ref, mean_ref, var_ref, acc_ref, accsq_ref)
# ---------------------------------------------------------------------------
def _fused_codenorm_kernel(x_ref, o_ref, mean_ref, var_ref, acc_ref, accsq_ref,
                           *, inv_count, eps, n_rows, need_mask):
    phase = pl.program_id(0)     # 0: accumulate stats, 1: normalize
    i = pl.program_id(1)         # row-block index

    @pl.when(jnp.logical_and(phase == 0, i == 0))
    def _init():
        acc_ref[...] = jnp.zeros_like(acc_ref)
        accsq_ref[...] = jnp.zeros_like(accsq_ref)

    @pl.when(phase == 0)
    def _accumulate():
        x = x_ref[...].astype(jnp.float32)
        if need_mask:  # static Python branch: only emitted for ragged row tails
            rows = (jax.lax.broadcasted_iota(jnp.int32, x.shape, 0)
                    + i * x.shape[0])
            x = jnp.where(rows < n_rows, x, 0.0)
        acc_ref[...] += x            # elementwise (VALU-only) accumulation
        accsq_ref[...] += x * x

    @pl.when(jnp.logical_and(phase == 1, i == 0))
    def _finalize_stats():
        total = jnp.sum(acc_ref[...], keepdims=True)       # (1, 1)
        total_sq = jnp.sum(accsq_ref[...], keepdims=True)  # (1, 1)
        mean = total * inv_count
        var = jnp.maximum(total_sq * inv_count - mean * mean, 0.0)  # biased, clamped
        mean_ref[...] = mean
        var_ref[...] = var

    @pl.when(phase == 1)
    def _normalize():
        mean = mean_ref[...]                               # (1, 1), grid-resident
        rstd = lax.rsqrt(var_ref[...] + eps)               # (1, 1)
        xf = x_ref[...].astype(jnp.float32)
        o_ref[...] = ((xf - mean) * rstd).astype(o_ref.dtype)


# ---------------------------------------------------------------------------
# Eval-mode kernel: normalize with precomputed (running) mean / rstd from SMEM.
# ---------------------------------------------------------------------------
def _normalize_kernel(stats_ref, x_ref, o_ref):
    mean = stats_ref[0]
    rstd = stats_ref[1]
    o_ref[...] = ((x_ref[...].astype(jnp.float32) - mean) * rstd).astype(o_ref.dtype)


def code_norm_1d(x, running_mean, running_var, num_batches_tracked, *,
                 eps=1e-5, momentum=0.1, training=True,
                 track_running_stats=True, block_rows=None):
    """Pallas implementation of CodeNorm1d.forward.

    Returns (out, new_running_mean, new_running_var, new_num_batches_tracked).
    """
    if x.ndim != 2:
        raise ValueError(f"Expected 2D input (N, L), got {x.ndim}D input")
    N, L = x.shape
    itemsize = jnp.dtype(x.dtype).itemsize
    sub = 16 if itemsize == 2 else 8

    if block_rows is None:
        block_rows = _choose_block_rows(N, L, itemsize)
    block_rows = int(block_rows)
    if block_rows >= N:
        block_rows = N                       # full dim: always a legal block size
    else:
        block_rows = max((block_rows // sub) * sub, sub)
        if block_rows >= N:
            block_rows = N

    nb = pl.cdiv(N, block_rows)
    need_mask = (N % block_rows) != 0

    use_batch_stats = training or not track_running_stats

    if use_batch_stats:
        kernel = functools.partial(
            _fused_codenorm_kernel,
            inv_count=1.0 / float(N * L),
            eps=float(eps),
            n_rows=N,
            need_mask=need_mask,
        )
        out, mean_out, var_out = pl.pallas_call(
            kernel,
            out_shape=(
                jax.ShapeDtypeStruct((N, L), x.dtype),
                jax.ShapeDtypeStruct((1, 1), jnp.float32),
                jax.ShapeDtypeStruct((1, 1), jnp.float32),
            ),
            grid_spec=pltpu.PrefetchScalarGridSpec(
                num_scalar_prefetch=0,
                grid=(2, nb),                # phase axis outermost, row blocks inner
                in_specs=[pl.BlockSpec((block_rows, L), lambda p, i: (i, 0))],
                out_specs=(
                    # p * i keeps the output block index pinned at 0 during the
                    # whole stats phase (no garbage write-backs); during the
                    # normalize phase it walks the row blocks normally.
                    pl.BlockSpec((block_rows, L), lambda p, i: (p * i, 0)),
                    pl.BlockSpec((1, 1), lambda p, i: (0, 0)),
                    pl.BlockSpec((1, 1), lambda p, i: (0, 0)),
                ),
                scratch_shapes=[
                    pltpu.VMEM((block_rows, L), jnp.float32),   # sum accumulator
                    pltpu.VMEM((block_rows, L), jnp.float32),   # sum-of-squares acc
                ],
            ),
            compiler_params=pltpu.CompilerParams(
                dimension_semantics=("arbitrary", "arbitrary")),
        )(x)

        batch_mean = mean_out[0, 0]
        batch_var = var_out[0, 0]

        if track_running_stats:
            new_rm = (1.0 - momentum) * running_mean + momentum * batch_mean
            new_rv = (1.0 - momentum) * running_var + momentum * batch_var
            new_nbt = num_batches_tracked + 1
        else:
            new_rm, new_rv, new_nbt = running_mean, running_var, num_batches_tracked
        return out, new_rm, new_rv, new_nbt

    # Eval mode with tracked stats: normalize with the running buffers.
    mean = jnp.asarray(running_mean, jnp.float32)
    rstd = lax.rsqrt(jnp.asarray(running_var, jnp.float32) + jnp.float32(eps))
    stats = jnp.stack([mean, rstd])          # (2,) f32 -> SMEM

    out = pl.pallas_call(
        _normalize_kernel,
        out_shape=jax.ShapeDtypeStruct((N, L), x.dtype),
        grid_spec=pltpu.PrefetchScalarGridSpec(
            num_scalar_prefetch=0,
            grid=(nb,),
            in_specs=[
                pl.BlockSpec(memory_space=pltpu.MemorySpace.SMEM),
                pl.BlockSpec((block_rows, L), lambda i: (i, 0)),
            ],
            out_specs=pl.BlockSpec((block_rows, L), lambda i: (i, 0)),
        ),
        compiler_params=pltpu.CompilerParams(
            dimension_semantics=("parallel",)),
    )(stats, x)
    return out, running_mean, running_var, num_batches_tracked


if __name__ == "__main__":
    key = jax.random.PRNGKey(0)
    N, L = 16, 256  # small 2D (N, L) input, as the module expects
    x = jax.random.normal(key, (N, L), dtype=jnp.float32) * 2.0 + 0.5

    # CodeNorm1d buffers as initialized in __init__ (scalars).
    running_mean = jnp.float32(0.0)
    running_var = jnp.float32(1.0)
    num_batches_tracked = jnp.int32(0)

    # --- training mode (batch stats + running-buffer update) ----------------
    fn = jax.jit(functools.partial(
        code_norm_1d, eps=1e-5, momentum=0.1,
        training=True, track_running_stats=True))
    out, new_rm, new_rv, new_nbt = fn(x, running_mean, running_var, num_batches_tracked)
    jax.block_until_ready(out)

    bm = jnp.mean(x)
    bv = jnp.mean((x - bm) ** 2)
    ref = (x - bm) / jnp.sqrt(bv + 1e-5)
    assert jnp.allclose(out, ref, atol=1e-4, rtol=1e-4), "mismatch vs reference"
    assert jnp.allclose(new_rm, 0.9 * 0.0 + 0.1 * bm, atol=1e-5)
    assert jnp.allclose(new_rv, 0.9 * 1.0 + 0.1 * bv, atol=1e-5)
    assert int(new_nbt) == 1

    # --- multi-tile + ragged-row path (forced small block_rows -> masking) ---
    N2, L2 = 20, 256
    x2 = jax.random.normal(jax.random.PRNGKey(1), (N2, L2), dtype=jnp.float32) - 1.5
    out2, _, _, _ = jax.jit(functools.partial(
        code_norm_1d, training=True, track_running_stats=True, block_rows=8))(
        x2, running_mean, running_var, num_batches_tracked)
    jax.block_until_ready(out2)
    bm2 = jnp.mean(x2)
    bv2 = jnp.mean((x2 - bm2) ** 2)
    ref2 = (x2 - bm2) / jnp.sqrt(bv2 + 1e-5)
    assert jnp.allclose(out2, ref2, atol=1e-4, rtol=1e-4), "ragged-tile mismatch"

    # --- eval mode (uses running stats, no batch reduction) ------------------
    out_eval, _, _, _ = jax.jit(functools.partial(
        code_norm_1d, training=False, track_running_stats=True))(
        x, new_rm, new_rv, new_nbt)
    jax.block_until_ready(out_eval)
    ref_eval = (x - new_rm) / jnp.sqrt(new_rv + 1e-5)
    assert jnp.allclose(out_eval, ref_eval, atol=1e-4, rtol=1e-4), "eval-mode mismatch"

    print("KERNEL_OK")
</pallas_src>

<mosaic_0001>
module attributes {stable_mosaic.version = 11 : i64} {
  func.func @_fused_codenorm_kernel(%arg0: i32, %arg1: i32, %arg2: memref<16x256xf32, #tpu.memory_space<vmem>>, %arg3: memref<16x256xf32, #tpu.memory_space<vmem>>, %arg4: memref<1x1xf32, #tpu.memory_space<vmem>>, %arg5: memref<1x1xf32, #tpu.memory_space<vmem>>, %arg6: memref<16x256xf32, #tpu.memory_space<vmem>>, %arg7: memref<16x256xf32, #tpu.memory_space<vmem>>) attributes {dimension_semantics = [#tpu.dimension_semantics<arbitrary>, #tpu.dimension_semantics<arbitrary>], iteration_bounds = array<i64: 2, 1>, scalar_prefetch = 0 : i64, scratch_operands = 2 : i64, tpu.core_type = #tpu.core_type<tc>, window_params = [{transform_indices = @transform_0, window_bounds = array<i64: 16, 256>}, {transform_indices = @transform_1, window_bounds = array<i64: 16, 256>}, {pipeline_mode = #tpu.pipeline_mode<synchronous>, transform_indices = @transform_2, window_bounds = array<i64: 1, 1>}, {pipeline_mode = #tpu.pipeline_mode<synchronous>, transform_indices = @transform_3, window_bounds = array<i64: 1, 1>}]} {
    %c0_i32 = arith.constant 0 : i32
    %0 = arith.cmpi eq, %arg0, %c0_i32 : i32
    %c0_i32_0 = arith.constant 0 : i32
    %1 = arith.cmpi eq, %arg1, %c0_i32_0 : i32
    %2 = arith.andi %0, %1 : i1
    %3 = arith.extui %2 : i1 to i32
    %c0_i32_1 = arith.constant 0 : i32
    %4 = arith.cmpi ne, %3, %c0_i32_1 : i32
    scf.if %4 {
      %cst = arith.constant 0.000000e+00 : f32
      %16 = vector.broadcast %cst : f32 to vector<16x256xf32>
      %c0 = arith.constant 0 : index
      %c0_8 = arith.constant 0 : index
      %17 = vector.load %arg6[%c0, %c0_8] : memref<16x256xf32, #tpu.memory_space<vmem>>, vector<16x256xf32>
      tpu.vector_store %arg6[%c0, %c0_8], %16 {strides = array<i32>} : memref<16x256xf32, #tpu.memory_space<vmem>>, vector<16x256xf32>,
      %cst_9 = arith.constant 0.000000e+00 : f32
      %18 = vector.broadcast %cst_9 : f32 to vector<16x256xf32>
      %c0_10 = arith.constant 0 : index
      %c0_11 = arith.constant 0 : index
      %19 = vector.load %arg7[%c0_10, %c0_11] : memref<16x256xf32, #tpu.memory_space<vmem>>, vector<16x256xf32>
      tpu.vector_store %arg7[%c0_10, %c0_11], %18 {strides = array<i32>} : memref<16x256xf32, #tpu.memory_space<vmem>>, vector<16x256xf32>,
    } else {
    }
    %c0_i32_2 = arith.constant 0 : i32
    %5 = arith.cmpi eq, %arg0, %c0_i32_2 : i32
    %6 = arith.extui %5 : i1 to i32
    %c0_i32_3 = arith.constant 0 : i32
    %7 = arith.cmpi ne, %6, %c0_i32_3 : i32
    scf.if %7 {
      %c0 = arith.constant 0 : index
      %c0_8 = arith.constant 0 : index
      %16 = vector.load %arg2[%c0, %c0_8] : memref<16x256xf32, #tpu.memory_space<vmem>>, vector<16x256xf32>
      %c0_9 = arith.constant 0 : index
      %c0_10 = arith.constant 0 : index
      %17 = vector.load %arg6[%c0_9, %c0_10] : memref<16x256xf32, #tpu.memory_space<vmem>>, vector<16x256xf32>
      %18 = arith.addf %17, %16 : vector<16x256xf32>
      %c0_11 = arith.constant 0 : index
      %c0_12 = arith.constant 0 : index
      %19 = vector.load %arg6[%c0_11, %c0_12] : memref<16x256xf32, #tpu.memory_space<vmem>>, vector<16x256xf32>
      tpu.vector_store %arg6[%c0_11, %c0_12], %18 {strides = array<i32>} : memref<16x256xf32, #tpu.memory_space<vmem>>, vector<16x256xf32>,
      %c0_13 = arith.constant 0 : index
      %c0_14 = arith.constant 0 : index
      %20 = vector.load %arg7[%c0_13, %c0_14] : memref<16x256xf32, #tpu.memory_space<vmem>>, vector<16x256xf32>
      %21 = arith.mulf %16, %16 : vector<16x256xf32>
      %22 = arith.addf %20, %21 : vector<16x256xf32>
      %c0_15 = arith.constant 0 : index
      %c0_16 = arith.constant 0 : index
      %23 = vector.load %arg7[%c0_15, %c0_16] : memref<16x256xf32, #tpu.memory_space<vmem>>, vector<16x256xf32>
      tpu.vector_store %arg7[%c0_15, %c0_16], %22 {strides = array<i32>} : memref<16x256xf32, #tpu.memory_space<vmem>>, vector<16x256xf32>,
    } else {
    }
    %c1_i32 = arith.constant 1 : i32
    %8 = arith.cmpi eq, %arg0, %c1_i32 : i32
    %c0_i32_4 = arith.constant 0 : i32
    %9 = arith.cmpi eq, %arg1, %c0_i32_4 : i32
    %10 = arith.andi %8, %9 : i1
    %11 = arith.extui %10 : i1 to i32
    %c0_i32_5 = arith.constant 0 : i32
    %12 = arith.cmpi ne, %11, %c0_i32_5 : i32
    scf.if %12 {
      %c0 = arith.constant 0 : index
      %c0_8 = arith.constant 0 : index
      %16 = vector.load %arg6[%c0, %c0_8] : memref<16x256xf32, #tpu.memory_space<vmem>>, vector<16x256xf32>
      %17 = vector.shape_cast %16 : vector<16x256xf32> to vector<1x16x256xf32>
      %cst = arith.constant dense<0.000000e+00> : vector<1xf32>
      %18 = vector.multi_reduction <add>, %17, %cst [1, 2] : vector<1x16x256xf32> to vector<1xf32>
      %19 = vector.shape_cast %18 : vector<1xf32> to vector<1x1x1xf32>
      %20 = vector.extract %19[0, 0, 0] : f32 from vector<1x1x1xf32>
      %21 = vector.broadcast %20 : f32 to vector<1x1xf32>
      %c0_9 = arith.constant 0 : index
      %c0_10 = arith.constant 0 : index
      %22 = vector.load %arg7[%c0_9, %c0_10] : memref<16x256xf32, #tpu.memory_space<vmem>>, vector<16x256xf32>
      %23 = vector.shape_cast %22 : vector<16x256xf32> to vector<1x16x256xf32>
      %cst_11 = arith.constant dense<0.000000e+00> : vector<1xf32>
      %24 = vector.multi_reduction <add>, %23, %cst_11 [1, 2] : vector<1x16x256xf32> to vector<1xf32>
      %25 = vector.shape_cast %24 : vector<1xf32> to vector<1x1x1xf32>
      %26 = vector.extract %25[0, 0, 0] : f32 from vector<1x1x1xf32>
      %27 = vector.broadcast %26 : f32 to vector<1x1xf32>
      %cst_12 = arith.constant 2.44140625E-4 : f32
      %28 = vector.broadcast %cst_12 : f32 to vector<1x1xf32>
      %29 = arith.mulf %21, %28 : vector<1x1xf32>
      %cst_13 = arith.constant 2.44140625E-4 : f32
      %30 = vector.broadcast %cst_13 : f32 to vector<1x1xf32>
      %31 = arith.mulf %27, %30 : vector<1x1xf32>
      %32 = arith.mulf %29, %29 : vector<1x1xf32>
      %33 = arith.subf %31, %32 : vector<1x1xf32>
      %cst_14 = arith.constant 0.000000e+00 : f32
      %34 = vector.broadcast %cst_14 : f32 to vector<1x1xf32>
      %35 = arith.maximumf %33, %34 : vector<1x1xf32>
      %c0_15 = arith.constant 0 : index
      %c0_16 = arith.constant 0 : index
      %36 = vector.load %arg4[%c0_15, %c0_16] : memref<1x1xf32, #tpu.memory_space<vmem>>, vector<1x1xf32>
      tpu.vector_store %arg4[%c0_15, %c0_16], %29 {strides = array<i32>} : memref<1x1xf32, #tpu.memory_space<vmem>>, vector<1x1xf32>,
      %c0_17 = arith.constant 0 : index
      %c0_18 = arith.constant 0 : index
      %37 = vector.load %arg5[%c0_17, %c0_18] : memref<1x1xf32, #tpu.memory_space<vmem>>, vector<1x1xf32>
      tpu.vector_store %arg5[%c0_17, %c0_18], %35 {strides = array<i32>} : memref<1x1xf32, #tpu.memory_space<vmem>>, vector<1x1xf32>,
    } else {
    }
    %c1_i32_6 = arith.constant 1 : i32
    %13 = arith.cmpi eq, %arg0, %c1_i32_6 : i32
    %14 = arith.extui %13 : i1 to i32
    %c0_i32_7 = arith.constant 0 : i32
    %15 = arith.cmpi ne, %14, %c0_i32_7 : i32
    scf.if %15 {
      %c0 = arith.constant 0 : index
      %c0_8 = arith.constant 0 : index
      %16 = vector.load %arg4[%c0, %c0_8] : memref<1x1xf32, #tpu.memory_space<vmem>>, vector<1x1xf32>
      %c0_9 = arith.constant 0 : index
      %c0_10 = arith.constant 0 : index
      %17 = vector.load %arg5[%c0_9, %c0_10] : memref<1x1xf32, #tpu.memory_space<vmem>>, vector<1x1xf32>
      %cst = arith.constant 9.99999974E-6 : f32
      %18 = vector.broadcast %cst : f32 to vector<1x1xf32>
      %19 = arith.addf %17, %18 : vector<1x1xf32>
      %20 = math.rsqrt %19 : vector<1x1xf32>
      %c0_11 = arith.constant 0 : index
      %c0_12 = arith.constant 0 : index
      %21 = vector.load %arg2[%c0_11, %c0_12] : memref<16x256xf32, #tpu.memory_space<vmem>>, vector<16x256xf32>
      %22 = vector.broadcast %16 : vector<1x1xf32> to vector<16x256xf32>
      %23 = arith.subf %21, %22 : vector<16x256xf32>
      %24 = vector.broadcast %20 : vector<1x1xf32> to vector<16x256xf32>
      %25 = arith.mulf %23, %24 : vector<16x256xf32>
      %c0_13 = arith.constant 0 : index
      %c0_14 = arith.constant 0 : index
      %26 = vector.load %arg3[%c0_13, %c0_14] : memref<16x256xf32, #tpu.memory_space<vmem>>, vector<16x256xf32>
      tpu.vector_store %arg3[%c0_13, %c0_14], %25 {strides = array<i32>} : memref<16x256xf32, #tpu.memory_space<vmem>>, vector<16x256xf32>,
    } else {
    }
    return
  }
  func.func @transform_0(%arg0: i32, %arg1: i32) -> (i32, i32) {
    %c0_i32 = arith.constant 0 : i32
    %c0_i32_0 = arith.constant 0 : i32
    return %arg1, %c0_i32 : i32, i32
  }
  func.func @transform_1(%arg0: i32, %arg1: i32) -> (i32, i32) {
    %0 = arith.muli %arg0, %arg1 : i32
    %c0_i32 = arith.constant 0 : i32
    %c0_i32_0 = arith.constant 0 : i32
    return %0, %c0_i32 : i32, i32
  }
  func.func @transform_2(%arg0: i32, %arg1: i32) -> (i32, i32) {
    %c0_i32 = arith.constant 0 : i32
    %c0_i32_0 = arith.constant 0 : i32
    %c0_i32_1 = arith.constant 0 : i32
    return %c0_i32, %c0_i32_0 : i32, i32
  }
  func.func @transform_3(%arg0: i32, %arg1: i32) -> (i32, i32) {
    %c0_i32 = arith.constant 0 : i32
    %c0_i32_0 = arith.constant 0 : i32
    %c0_i32_1 = arith.constant 0 : i32
    return %c0_i32, %c0_i32_0 : i32, i32
  }
}

</mosaic_0001>

<bundles_post_ra>
// kernel: code_norm_1d.1
= control target key start
LH: loop header
LB: loop body
LE: loop exit
PB: predicated region body
PF: predicated region fallthrough
CT: control target
= control target key end

     0   :  { %9 = vsyncpa [#allocation5], 0  ;;  %s818_s0 = inlined_call_operand.hbm [shape: f32[16,256], index: 0, kind: input, shape index: {}]   ;;  %s819_s1 = inlined_call_operand.hbm [shape: f32[16,256], index: 1, kind: output, shape index: {0}]   ;;  %s820_s2 = inlined_call_operand.hbm [shape: f32[1,1], index: 2, kind: output, shape index: {1}]   ;;  %s821_s3 = inlined_call_operand.hbm [shape: f32[1,1], index: 3, kind: output, shape index: {2}]  }
   0x1   :  { %10 = vsyncpa [#allocation6], 0 }
   0x2   :  { %12 = vsyncpa [#allocation6 + $0x1], 0 }
   0x3   :  { %13 = vsyncpa [#allocation9], 0  ;;  %s740_s12 = smov 0   ;;  %s742_s13 = smov 0  }
   0x4   :  { %s744_s14 = smov 0  }
   0x5 LB: > { %s465_s15 = sadd.s32 4294967295, %s708_s14   ;;  %s466_s16 = sadd.s32 4294967294, %s708_s14   ;;  %s708_s14 = sphi %s744_s14, %s19_s14   ;;  %s704_s13 = sphi %s742_s13, %s825_s13   ;;  %s700_s12 = sphi %s740_s12, %s824_s12  }
   0x6   : > { %s31_s17 = sadd.s32 1, %s704_s13  ;;  %p467_p0 = scmp.ge.s32.totalorder %s708_s14, 1 }
   0x7   : > { %p33_p1 = scmp.ge.s32.totalorder %s31_s17, 2  ;;  %p132_p2 = scmp.lt.s32.totalorder %s708_s14, 3 }
   0x8   : > { %p762_p3 = scmp.eq.s32.totalorder %s465_s15, 0  ;;  %s147_s21 = sshll.u32 %s818_s0, 4  ;;  %s148_s21 = int_to_ptr.hbm [resolvable:$true] %s147_s21 }
   0x9   : > { %s827_s17 = smov (%p33_p1, %s31_s17), 0  ;;  %p133_p4 = pnand %p467_p0, %p132_p2 }
   0xa   : > { %s710_s22 = smov [#allocation4]   ;;  %s711_s24 = smov 256  }
   0xb   : > { %p505_p5 = pneg %p133_p4  ;;  %s149_s23 = sshll.u32 %s710_s22, 4  ;;  %s150_s23 = int_to_ptr.vmem [resolvable:$true] %s149_s23 }
   0xc   : > { %s712_s25 = smov 16   ;;  %165 = sbr.rel (%p133_p4) target bundleno = 411 (0x19b), region = 24 }
   0xd   : > { %p506_p6 = pnand %p762_p3, %p505_p5 }
   0xf   : > { %508 = dma.hbm_to_vmem [thread:$0]  (!%p506_p6), %s148_s21, 512, %s150_s23, [#allocation5], %s711_s24, %s711_s24, %s712_s25  }
  0x11   : > { %687 = dma.done.wait (%p762_p3), [#allocation5], 512  }
  0x12   : > { %689 = vsyncadd (%p762_p3), [#allocation5], 4294966784  ;;  %p188_p7 = scmp.eq.s32.totalorder %s700_s12, 0 }
  0x13   : > { %v713_v0 = vmov (%p188_p7), 0.0  }
  0x14   : > { %193 = sbr.rel (!%p188_p7) target bundleno = 28 (0x1c), region = 32  ;;  %194 = vst [vmem:[#allocation2 + $0x10] sm:$0xff] (%p188_p7), %v713_v0 }
  0x15   : > { %195 = vst [vmem:[#allocation2] sm:$0xff] (%p188_p7), %v713_v0 }
  0x16   : > { %196 = vst [vmem:[#allocation2 + $0x18] sm:$0xff] (%p188_p7), %v713_v0 }
  0x17   : > { %197 = vst [vmem:[#allocation2 + $0x8] sm:$0xff] (%p188_p7), %v713_v0 }
  0x18   : > { %198 = vst [vmem:[#allocation3] sm:$0xff] (%p188_p7), %v713_v0 }
  0x19   : > { %199 = vst [vmem:[#allocation3 + $0x18] sm:$0xff] %v713_v0 }
  0x1a   : > { %200 = vst [vmem:[#allocation3 + $0x8] sm:$0xff] %v713_v0 }
  0x1b   : > { %201 = vst [vmem:[#allocation3 + $0x10] sm:$0xff] %v713_v0 }
  0x1c PF: > { %p472_p8 = scmp.ne.s32.totalorder %s700_s12, 0 }
  0x1e   : > { %204 = sbr.rel (%p472_p8) target bundleno = 46 (0x2e), region = 36 }
  0x23   : > { %v205_v1 = vld [vmem:[#allocation4] sm:$0xff]  ;;  %v209_v2 = vld [vmem:[#allocation2 + $0x10] sm:$0xff]  ;;  %v206_v3 = vld [vmem:[#allocation4 + $0x8] sm:$0xff] }
  0x24   : > { %v213_v4 = vadd.f32 %v209_v2, %v205_v1  ;;  %v210_v5 = vld [vmem:[#allocation2] sm:$0xff]  ;;  %v207_v6 = vld [vmem:[#allocation4 + $0x10] sm:$0xff]  ;;  %v211_v7 = vld [vmem:[#allocation2 + $0x18] sm:$0xff]  ;;  %v225_v8 = vmul.f32 %v205_v1, %v205_v1  ;;  %v226_v9 = vmul.f32 %v206_v3, %v206_v3 }
  0x25   : > { %v214_v10 = vadd.f32 %v210_v5, %v206_v3  ;;  %v215_v11 = vadd.f32 %v211_v7, %v207_v6  ;;  %v208_v12 = vld [vmem:[#allocation4 + $0x18] sm:$0xff]  ;;  %v212_v13 = vld [vmem:[#allocation2 + $0x8] sm:$0xff]  ;;  %v221_v14 = vld [vmem:[#allocation3] sm:$0xff]  ;;  %v227_v15 = vmul.f32 %v207_v6, %v207_v6 }
  0x26   : > { %217 = vst [vmem:[#allocation2 + $0x10] sm:$0xff] %v213_v4  ;;  %v216_v16 = vadd.f32 %v212_v13, %v208_v12  ;;  %v229_v17 = vadd.f32 %v225_v8, %v221_v14  ;;  %v222_v18 = vld [vmem:[#allocation3 + $0x18] sm:$0xff]  ;;  %v223_v19 = vld [vmem:[#allocation3 + $0x8] sm:$0xff]  ;;  %v224_v20 = vld [vmem:[#allocation3 + $0x10] sm:$0xff]  ;;  %v228_v21 = vmul.f32 %v208_v12, %v208_v12 }
  0x27   : > { %218 = vst [vmem:[#allocation2] sm:$0xff] %v214_v10  ;;  %v230_v22 = vadd.f32 %v226_v9, %v222_v18  ;;  %v231_v23 = vadd.f32 %v227_v15, %v223_v19 }
  0x28   : > { %219 = vst [vmem:[#allocation2 + $0x18] sm:$0xff] %v215_v11  ;;  %v232_v24 = vadd.f32 %v228_v21, %v224_v20 }
  0x29   : > { %220 = vst [vmem:[#allocation2 + $0x8] sm:$0xff] %v216_v16 }
  0x2a   : > { %233 = vst [vmem:[#allocation3] sm:$0xff] %v229_v17 }
  0x2b   : > { %234 = vst [vmem:[#allocation3 + $0x18] sm:$0xff] %v230_v22 }
  0x2c   : > { %235 = vst [vmem:[#allocation3 + $0x8] sm:$0xff] %v231_v23 }
  0x2d   : > { %236 = vst [vmem:[#allocation3 + $0x10] sm:$0xff] %v232_v24 }
  0x2e PF: > { %p237_p9 = scmp.eq.s32.totalorder %s700_s12, 1 }
  0x2f   : > { %v242_v25 = vld [vmem:[#allocation2 + $0x10] sm:$0xff] (%p237_p9)  ;;  %v243_v26 = vld [vmem:[#allocation2] sm:$0xff] (%p237_p9)  ;;  %v244_v27 = vld [vmem:[#allocation2 + $0x18] sm:$0xff] (%p237_p9)  ;;  %vm281_vm0 = vcmask (%p237_p9), 0  }
  0x30   : > { %241 = sbr.rel (!%p237_p9) target bundleno = 248 (0xf8), region = 40  ;;  %v246_v28 = vadd.f32 (%p237_p9), %v243_v26, %v242_v25  ;;  %v245_v31 = vld [vmem:[#allocation2 + $0x8] sm:$0xff] (%p237_p9) }
  0x31   : > { %v259_v29 = vld [vmem:[#allocation3] sm:$0xff] (%p237_p9) }
  0x32   : > { %v260_v30 = vld [vmem:[#allocation3 + $0x18] sm:$0xff] (%p237_p9)  ;;  %v247_v32 = vadd.f32 (%p237_p9), %v246_v28, %v244_v27 }
  0x33   : > { %v263_v33 = vadd.f32 (%p237_p9), %v260_v30, %v259_v29  ;;  %v261_v34 = vld [vmem:[#allocation3 + $0x8] sm:$0xff] (%p237_p9) }
  0x34   : > { %v248_v35 = vadd.f32 (%p237_p9), %v247_v32, %v245_v31  ;;  %v262_v37 = vld [vmem:[#allocation3 + $0x10] sm:$0xff] (%p237_p9) }
  0x35   : > { %v264_v36 = vadd.f32 %v263_v33, %v261_v34 }
  0x36   : > { %249 = vadd.xlane.f32.xlu0 %v248_v35 }
  0x37   : > { %v265_v38 = vadd.f32 %v264_v36, %v262_v37 }
  0x3e   : > { %266 = vadd.xlane.f32.xlu0 %v265_v38 }
  0xa9   : > { %v250_v39 = vpop.xlane.xlu0 %249 }
  0xaa   : > { %v251_v40 = vrot.slane %v250_v39, 4 }
  0xac   : > { %v252_v41 = vadd.f32 %v251_v40, %v250_v39 }
  0xae   : > { %v253_v42 = vrot.slane %v252_v41, 2 }
  0xb0   : > { %v254_v43 = vadd.f32 %v253_v42, %v252_v41 }
  0xb1   : > { %v267_v44 = vpop.xlane.xlu0 %266 }
  0xb2   : > { %v268_v45 = vrot.slane %v267_v44, 4  ;;  %v255_v46 = vrot.slane %v254_v43, 1 }
  0xb4   : > { %v269_v47 = vadd.f32 %v268_v45, %v267_v44  ;;  %v256_v48 = vadd.f32 %v255_v46, %v254_v43 }
  0xb6   : > { %v270_v49 = vrot.slane %v269_v47, 2  ;;  %485 = vpush %v256_v48 }
  0xb8   : > { %v271_v50 = vadd.f32 %v270_v49, %v269_v47 }
  0xba   : > { %v272_v51 = vrot.slane %v271_v50, 1 }
  0xbc   : > { %v273_v52 = vadd.f32 %v272_v51, %v271_v50 }
  0xbe   : > { %487 = vpush %v273_v52 }
  0xe7   : > { %s486_s26 = spop %485 }
  0xe8   : > { %v258_v53 = vstv %s486_s26 }
  0xe9   : > { %v276_v54 = vmul.f32 0.00024414063, %v258_v53 }
  0xeb   : > { %282 = vst.msk [vmem:[#allocation8] sm:$0x1] %vm281_vm0, %v276_v54  ;;  %v278_v56 = vmul.f32 %v276_v54, %v276_v54 }
  0xef   : > { %s488_s27 = spop %487 }
  0xf0   : > { %v275_v55 = vstv %s488_s27 }
  0xf1   : > { %v277_v57 = vmul.f32 0.00024414063, %v275_v55 }
  0xf3   : > { %v279_v58 = vsub.f32 %v277_v57, %v278_v56 }
  0xf5   : > { %v280_v59 = vmax.f32 %v279_v58, 0.0 }
  0xf7   : > { %283 = vst.msk [vmem:[#allocation10] sm:$0x1] %vm281_vm0, %v280_v59 }
  0xf8 PF: > { %p474_p10 = scmp.ne.s32.totalorder %s700_s12, 1 }
  0xfa   : > { %286 = sbr.rel (%p474_p10) target bundleno = 399 (0x18f), region = 44 }
  0xff   : > { %v557_v60 = vld [vmem:[#allocation8] ss:$0 sm:$0xff]  ;;  %v714_v61 = vmov 0   ;;  %v288_v62 = vld [vmem:[#allocation10] sm:$0x1]  ;;  %v301_v10 = vld [vmem:[#allocation4 + $0x8] sm:$0xff] }
 0x100   : > { %556 = vset.pattern.permute.xlu0 %v714_v61  ;;  %v289_v63 = vadd.f32 1e-05, %v288_v62  ;;  %v300_v9 = vld [vmem:[#allocation4] sm:$0xff]  ;;  %v302_v11 = vld [vmem:[#allocation4 + $0x10] sm:$0xff]  ;;  %v303_v12 = vld [vmem:[#allocation4 + $0x18] sm:$0xff] }
 0x101   : > { %307 = vperm.xlu0 %556, %v557_v60  }
 0x102   : > { %558 = vrsqrt.f32 %v289_v63  ;;  %vm296_vm1 = vweird.f32 %v289_v63 }
 0x108   : > { %v559_v0 = vpop.eup %558 }
 0x109   : > { %v291_v1 = vmul.f32 %v559_v0, %v289_v63  ;;  %vm297_vm2 = vweird.f32 %v559_v0 }
 0x10a   : > { %vm298_vm3 = vmor %vm296_vm1, %vm297_vm2 }
 0x10b   : > { %v292_v2 = vmul.f32 %v559_v0, %v291_v1 }
 0x10d   : > { %v293_v3 = vmul.f32 0.5, %v292_v2 }
 0x10f   : > { %v294_v4 = vsub.f32 1.5, %v293_v3 }
 0x111   : > { %v295_v5 = vmul.f32 %v559_v0, %v294_v4 }
 0x113   : > { %v299_v6 = vsel %vm298_vm3, %v559_v0, %v295_v5 }
 0x114   : > { %v315_v7 = vperm.slane %v299_v6, 0 }
 0x116   : > { %317 = vperm.xlu0 %556, %v315_v7  }
 0x173   : > { %v308_v8 = vpop.permute.xlu0 %307 }
 0x174   : > { %v310_v13 = vsub.f32 %v300_v9, %v308_v8  ;;  %v311_v14 = vsub.f32 %v301_v10, %v308_v8  ;;  %v312_v15 = vsub.f32 %v302_v11, %v308_v8  ;;  %v313_v16 = vsub.f32 %v303_v12, %v308_v8 }
 0x188   : > { %v318_v17 = vpop.permute.xlu0 %317 }
 0x189   : > { %v320_v18 = vmul.f32 %v318_v17, %v310_v13  ;;  %v321_v19 = vmul.f32 %v318_v17, %v311_v14  ;;  %v322_v20 = vmul.f32 %v318_v17, %v312_v15  ;;  %v323_v21 = vmul.f32 %v318_v17, %v313_v16 }
 0x18b   : > { %324 = vst [vmem:[#allocation7] sm:$0xff] %v320_v18 }
 0x18c   : > { %325 = vst [vmem:[#allocation7 + $0x8] sm:$0xff] %v321_v19 }
 0x18d   : > { %326 = vst [vmem:[#allocation7 + $0x10] sm:$0xff] %v322_v20 }
 0x18e   : > { %327 = vst [vmem:[#allocation7 + $0x18] sm:$0xff] %v323_v21 }
 0x18f PF: > { %p783_p11 = scmp.eq.s32.totalorder %s465_s15, 1  ;;  %s715_s29 = smov [#allocation8]  }
 0x190   : > { %s358_s30 = sshll.u32 %s715_s29, 4  ;;  %s360_s6 = sshll.u32 %s820_s2, 4  ;;  %s359_s30 = int_to_ptr.vmem [resolvable:$true] %s358_s30  ;;  %s361_s6 = int_to_ptr.hbm [resolvable:$true] %s360_s6 }
 0x191   : > { %496 = dma.vmem_to_hbm [thread:$0]  (%p783_p11), %s359_s30, 16, %s361_s6, [#allocation9]  }
 0x192   : > { %s716_s7 = smov [#allocation7]   ;;  %s345_s11 = sshll.u32 %s819_s1, 4  ;;  %s346_s11 = int_to_ptr.hbm [resolvable:$true] %s345_s11 }
 0x193   : > { %s343_s8 = sshll.u32 %s716_s7, 4  ;;  %s717_s12 = smov 256   ;;  %s344_s8 = int_to_ptr.vmem [resolvable:$true] %s343_s8 }
 0x194   : > { %s718_s15 = smov 16   ;;  %s372_s20 = sshll.u32 %s821_s3, 4  ;;  %s373_s20 = int_to_ptr.hbm [resolvable:$true] %s372_s20 }
 0x195   : > { %494 = dma.vmem_to_hbm [thread:$0]  (%p783_p11), %s344_s8, 512, %s346_s11, [#allocation6], %s717_s12, %s717_s12, %s718_s15  }
 0x196   : > { %s719_s21 = smov [#allocation10]  }
 0x197   : > { %s370_s22 = sshll.u32 %s719_s21, 4  ;;  %s371_s22 = int_to_ptr.vmem [resolvable:$true] %s370_s22 }
 0x198   : > { %498 = dma.vmem_to_hbm [thread:$0]  (%p783_p11), %s371_s22, 16, %s373_s20, [#allocation9]  }
 0x199   : > { %691 = dma.done.wait (%p783_p11), [#allocation9], 32  }
 0x19a   : > { %693 = vsyncadd (%p783_p11), [#allocation9], 4294967264 }
 0x19b PF: > { %p520_p12 = scmp.ge.s32.totalorder %s708_s14, 2  ;;  %p521_p13 = scmp.eq.s32.totalorder %s466_s16, 1 }
 0x19d   : > { %p510_p0 = pnand %p521_p13, %p520_p12 }
 0x19f   : > { %p511_p1 = pneg %p510_p0 }
 0x1a1   : > { %695 = dma.done.wait (%p511_p1), [#allocation6], 512  }
 0x1a2   : > { %697 = vsyncadd (%p511_p1), [#allocation6], 4294966784  ;;  %s19_s14 = sadd.s32 1, %s708_s14   ;;  %s824_s12 = smov %s704_s13 }
 0x1a3   : > { %p16_p2 = scmp.ge.s32.totalorder %s19_s14, 4   ;;  %s825_s13 = smov %s827_s17 }
 0x1a5   :  { %18 = sbr.rel (!%p16_p2) target bundleno = 5 (0x5), region = 94 }
 0x1aa   :  { %401 = vsyncpa [#allocation5], 1 }
 0x1ab   :  { %403 = vsyncpa [#allocation5 + $0x1], 1 }
 0x1ac   :  { %404 = vsyncpa [#allocation6], 1 }
 0x1ad   :  { %406 = vsyncpa [#allocation6 + $0x1], 1 }
 0x1ae   :  { %407 = vsyncpa [#allocation9], 1 }

</bundles_post_ra>
